<compile_context>
chip_gen: v7x
topology: tpu7x:2x2x1
jax: 0.10.0
libtpu: 0.0.40
codegen_flags: <defaults>
</compile_context>

<pallas_src>
import functools

import jax
import jax.numpy as jnp
import numpy as np
from jax.experimental import pallas as pl
from jax.experimental.pallas import tpu as pltpu


# ----------------------------- helpers --------------------------------------

def _round_up(x, m):
    return ((x + m - 1) // m) * m


def _choose_tile(dim, target, align=128):
    """Pick a ~target-sized tile (multiple of `align`) minimizing padding.

    Returns (tile, padded_dim) with padded_dim = tile * n_tiles >= dim.
    """
    padded = _round_up(dim, align)
    n = max(1, -(-padded // target))            # ceil(padded / target)
    tile = _round_up(-(-padded // n), align)    # ceil(padded / n) rounded up
    return tile, tile * n


def _apply_act(y, act):
    if act == "relu":
        return jnp.maximum(y, 0.0)
    if act == "sigmoid":
        # single EUP op (tanh) instead of exp + divide
        return 0.5 * jnp.tanh(0.5 * y) + 0.5
    if act == "identity":
        return y
    raise ValueError(f"bad activation {act}")


def _vmem_limit(need_bytes):
    # need_bytes already includes double-buffering; add headroom, stay well
    # under v7x's 64 MiB/TC physical VMEM (and v5e/v6e scoped budgets).
    return int(min(max(need_bytes + (4 << 20), 16 << 20), 56 << 20))


# ----------------------------- encoder kernel --------------------------------

def _encoder_kernel(*refs, n_enc, has_ctx, f_act):
    # refs: x_ref, w0_ref, b0_ref, (w_i, b_i)*(n_enc-1), [ctx_ref], h_ref, acc_ref
    x_ref, w0_ref, b0_ref = refs[0], refs[1], refs[2]
    pos = 3
    rest = []
    for _ in range(n_enc - 1):
        rest.append((refs[pos], refs[pos + 1]))
        pos += 2
    ctx_ref = refs[pos] if has_ctx else None
    if has_ctx:
        pos += 1
    h_ref = refs[pos]
    acc_ref = refs[pos + 1]

    k = pl.program_id(1)

    @pl.when(k == 0)
    def _init():
        acc_ref[...] = jnp.zeros_like(acc_ref)

    # Layer-0 partial product for this K chunk (f32 accumulation on the MXU).
    x = x_ref[...]
    if x.dtype != w0_ref.dtype:
        x = x.astype(w0_ref.dtype)
    acc_ref[...] += jnp.dot(x, w0_ref[...], preferred_element_type=jnp.float32)

    @pl.when(k == pl.num_programs(1) - 1)
    def _finish():
        y = acc_ref[...] + b0_ref[...]
        if n_enc == 1 and ctx_ref is not None:
            y = y + ctx_ref[...]          # f(encoded + additional_context)
        h = _apply_act(y, f_act)
        for li, (w_ref, b_ref) in enumerate(rest):
            hh = h if h.dtype == w_ref.dtype else h.astype(w_ref.dtype)
            y = jnp.dot(hh, w_ref[...],
                        preferred_element_type=jnp.float32) + b_ref[...]
            if li == len(rest) - 1 and ctx_ref is not None:
                y = y + ctx_ref[...]
            h = _apply_act(y, f_act)
        h_ref[...] = h.astype(h_ref.dtype)


def _encoder_call(x_p, w0_p, b0, rest_ws, rest_bs, ctx_p, *, tm, tk, f_act):
    M_pad, K_pad = x_p.shape
    L0 = w0_p.shape[1]
    L_last = rest_ws[-1].shape[1] if rest_ws else L0
    n_enc = 1 + len(rest_ws)
    has_ctx = ctx_p is not None
    grid = (M_pad // tm, K_pad // tk)

    in_specs = [
        pl.BlockSpec((tm, tk), lambda i, k: (i, k)),   # x chunk
        pl.BlockSpec((tk, L0), lambda i, k: (k, 0)),   # W0 chunk
        pl.BlockSpec((1, L0), lambda i, k: (0, 0)),    # b0
    ]
    operands = [x_p, w0_p, b0]
    in_blk_bytes = (tm * tk * x_p.dtype.itemsize
                    + tk * L0 * w0_p.dtype.itemsize + L0 * 4)
    for w, b in zip(rest_ws, rest_bs):
        din, dout = w.shape
        in_specs.append(pl.BlockSpec((din, dout), lambda i, k: (0, 0)))
        in_specs.append(pl.BlockSpec((1, dout), lambda i, k: (0, 0)))
        operands += [w, b]
        in_blk_bytes += din * dout * w.dtype.itemsize + dout * 4
    if has_ctx:
        in_specs.append(pl.BlockSpec((tm, L_last), lambda i, k: (i, 0)))
        operands.append(ctx_p)
        in_blk_bytes += tm * L_last * 4

    out_spec = pl.BlockSpec((tm, L_last), lambda i, k: (i, 0))
    need = 2 * in_blk_bytes + 2 * tm * L_last * 4 + tm * L0 * 4

    flops = 2 * M_pad * K_pad * L0
    din = L0
    for w in rest_ws:
        flops += 2 * M_pad * din * int(w.shape[1])
        din = int(w.shape[1])
    trans = 0
    if f_act == "sigmoid":
        trans = M_pad * (L0 + sum(int(w.shape[1]) for w in rest_ws))
    bytes_accessed = int(
        int(x_p.size) * x_p.dtype.itemsize
        + int(w0_p.size) * w0_p.dtype.itemsize
        + sum(int(w.size) * w.dtype.itemsize for w in rest_ws)
        + (int(ctx_p.size) * 4 if has_ctx else 0)
        + M_pad * L_last * 4)

    kernel = functools.partial(_encoder_kernel, n_enc=n_enc,
                               has_ctx=has_ctx, f_act=f_act)
    return pl.pallas_call(
        kernel,
        out_shape=jax.ShapeDtypeStruct((M_pad, L_last), jnp.float32),
        grid_spec=pltpu.PrefetchScalarGridSpec(
            num_scalar_prefetch=0,
            grid=grid,
            in_specs=in_specs,
            out_specs=out_spec,
            scratch_shapes=[pltpu.VMEM((tm, L0), jnp.float32)],
        ),
        compiler_params=pltpu.CompilerParams(
            dimension_semantics=("parallel", "arbitrary"),
            vmem_limit_bytes=_vmem_limit(need),
        ),
        cost_estimate=pl.CostEstimate(
            flops=int(flops), transcendentals=int(trans),
            bytes_accessed=bytes_accessed),
    )(*operands)


# ----------------------------- decoder kernel --------------------------------

def _decoder_kernel(h_ref, dw_ref, db_ref, o_ref, *, g_act):
    h = h_ref[...]
    if h.dtype != dw_ref.dtype:
        h = h.astype(dw_ref.dtype)
    y = jnp.dot(h, dw_ref[...], preferred_element_type=jnp.float32) + db_ref[...]
    o_ref[...] = _apply_act(y, g_act).astype(o_ref.dtype)


def _decoder_call(h, dec_w_p, dec_b_p, *, tm, tn, g_act, out_dtype):
    M_pad, L_last = h.shape
    N_pad = dec_w_p.shape[1]
    # N tiles OUTER, batch tiles inner: dec_w block index depends only on the
    # outer axis, so the full decoder weight is streamed from HBM exactly once.
    grid = (N_pad // tn, M_pad // tm)

    out_itemsize = np.dtype(out_dtype).itemsize
    need = (2 * (tm * L_last * h.dtype.itemsize
                 + L_last * tn * dec_w_p.dtype.itemsize + tn * 4)
            + 2 * tm * tn * out_itemsize)
    flops = 2 * M_pad * L_last * N_pad
    trans = M_pad * N_pad if g_act == "sigmoid" else 0
    bytes_accessed = int(int(h.size) * h.dtype.itemsize
                         + int(dec_w_p.size) * dec_w_p.dtype.itemsize
                         + int(dec_b_p.size) * 4
                         + M_pad * N_pad * out_itemsize)

    return pl.pallas_call(
        functools.partial(_decoder_kernel, g_act=g_act),
        out_shape=jax.ShapeDtypeStruct((M_pad, N_pad), out_dtype),
        grid_spec=pltpu.PrefetchScalarGridSpec(
            num_scalar_prefetch=0,
            grid=grid,
            in_specs=[
                pl.BlockSpec((tm, L_last), lambda j, i: (i, 0)),   # encoded
                pl.BlockSpec((L_last, tn), lambda j, i: (0, j)),   # dec W tile
                pl.BlockSpec((1, tn), lambda j, i: (0, j)),        # dec bias
            ],
            out_specs=pl.BlockSpec((tm, tn), lambda j, i: (i, j)),
        ),
        compiler_params=pltpu.CompilerParams(
            # N axis parallel -> megacore splits the decoder even when the
            # batch fits a single tile (small-batch serving on v7x).
            dimension_semantics=("parallel", "arbitrary"),
            vmem_limit_bytes=_vmem_limit(need),
        ),
        cost_estimate=pl.CostEstimate(
            flops=int(flops), transcendentals=int(trans),
            bytes_accessed=bytes_accessed),
    )(h, dec_w_p, dec_b_p)


# ------------------------------ model class ----------------------------------

class AutoRecPallas:
    """Pallas re-implementation of AutoRec.forward."""

    def __init__(self, n_movies, layer_sizes, f="relu", g="sigmoid", seed=0,
                 param_dtype=jnp.bfloat16):
        assert f in ("relu", "sigmoid", "identity")
        assert g in ("relu", "sigmoid", "identity")
        self.n_movies = n_movies
        self.layer_sizes = list(layer_sizes)
        self.f = f
        self.g = g
        self.param_dtype = np.dtype(param_dtype)

        # Tiling that depends only on static model dims — so all WEIGHT
        # padding happens once here, never on the per-call hot path.
        self.tk, self.K_pad = _choose_tile(n_movies, 2048)   # layer-0 K chunk
        self.tn, self.N_pad = _choose_tile(n_movies, 2048)   # decoder out tile

        key = jax.random.PRNGKey(seed)
        self.enc_w_t = []     # transposed (in, out); layer 0 pre-padded to K_pad
        self.enc_b = []       # (1, out) float32
        in_dim = n_movies
        for li, out_dim in enumerate(self.layer_sizes):
            key, kw, kb = jax.random.split(key, 3)
            bound = 1.0 / np.sqrt(in_dim)   # PyTorch nn.Linear default init
            w = jax.random.uniform(kw, (out_dim, in_dim), jnp.float32, -bound, bound)
            b = jax.random.uniform(kb, (out_dim,), jnp.float32, -bound, bound)
            w_t = w.T
            if li == 0 and self.K_pad != n_movies:
                w_t = jnp.pad(w_t, ((0, self.K_pad - n_movies), (0, 0)))
            self.enc_w_t.append(w_t.astype(self.param_dtype))
            self.enc_b.append(b.reshape(1, -1).astype(jnp.float32))
            in_dim = out_dim

        key, kw, kb = jax.random.split(key, 3)
        bound = 1.0 / np.sqrt(self.layer_sizes[-1])
        dw = jax.random.uniform(kw, (n_movies, self.layer_sizes[-1]),
                                jnp.float32, -bound, bound)
        db = jax.random.uniform(kb, (n_movies,), jnp.float32, -bound, bound)
        dw_t = dw.T
        if self.N_pad != n_movies:
            dw_t = jnp.pad(dw_t, ((0, 0), (0, self.N_pad - n_movies)))
            db = jnp.pad(db, (0, self.N_pad - n_movies))
        self.dec_w_t = dw_t.astype(self.param_dtype)           # (L_last, N_pad)
        self.dec_b = db.reshape(1, -1).astype(jnp.float32)     # (1, N_pad)

    # ---------------------------- forward ------------------------------------
    def forward(self, x, additional_context=None, range01=True, out_dtype=None):
        M, K = x.shape
        assert K == self.n_movies
        out_dtype = np.dtype(out_dtype) if out_dtype is not None else x.dtype

        if M <= 256:
            tm = _round_up(M, 8)
            M_pad = tm
        else:
            tm = 256
            M_pad = _round_up(M, 256)

        x_p = x
        if (M_pad, self.K_pad) != (M, K):
            # TODO(synk): callers that keep the rating matrix pre-padded to
            # K_pad can skip this per-call activation pad entirely.
            x_p = jnp.pad(x, ((0, M_pad - M), (0, self.K_pad - K)))

        ctx_p = additional_context
        if ctx_p is not None:
            ctx_p = ctx_p.astype(jnp.float32)
            if M_pad != M:
                ctx_p = jnp.pad(ctx_p, ((0, M_pad - M), (0, 0)))

        h = _encoder_call(x_p, self.enc_w_t[0], self.enc_b[0],
                          self.enc_w_t[1:], self.enc_b[1:], ctx_p,
                          tm=tm, tk=self.tk, f_act=self.f)

        g_act = self.g if range01 else "identity"
        out = _decoder_call(h, self.dec_w_t, self.dec_b,
                            tm=tm, tn=self.tn, g_act=g_act, out_dtype=out_dtype)
        return out[:M, :self.n_movies]

    # ---------------------- pure-JAX reference -------------------------------
    def forward_ref(self, x, additional_context=None, range01=True):
        acts = {"relu": jax.nn.relu, "sigmoid": jax.nn.sigmoid,
                "identity": lambda v: v}
        wdt = self.param_dtype
        K = self.n_movies

        def lin(a, w_t, b):
            # mimic the kernel: activations rounded to the weight dtype,
            # products accumulated in f32.
            return a.astype(wdt).astype(jnp.float32) @ w_t.astype(jnp.float32) + b

        h = x
        n_enc = len(self.enc_w_t)
        for i in range(n_enc):
            w = self.enc_w_t[i][:K] if i == 0 else self.enc_w_t[i]
            y = lin(h, w, self.enc_b[i])
            if i == n_enc - 1 and additional_context is not None:
                y = y + additional_context
            h = acts[self.f](y)
        y = lin(h, self.dec_w_t[:, :K], self.dec_b[:, :K])
        return acts[self.g](y) if range01 else y


# ---------------------------------- main --------------------------------------

if __name__ == "__main__":
    # deliberately ragged shapes (batch % 8 != 0, n_movies % 128 != 0) to
    # exercise the padding paths; layer_sizes=[256, 128] like a small AutoRec.
    batch = 5
    n_movies = 500
    layer_sizes = [256, 128]

    model = AutoRecPallas(n_movies, layer_sizes, f="relu", g="sigmoid", seed=0,
                          param_dtype=jnp.bfloat16)

    key = jax.random.PRNGKey(0)
    k_in, k_ctx = jax.random.split(key)
    x = jax.random.uniform(k_in, (batch, n_movies), jnp.float32)
    ctx = jax.random.normal(k_ctx, (batch, layer_sizes[-1]), jnp.float32)

    # path 1: additional_context + sigmoid output
    out = jax.block_until_ready(model.forward(x, additional_context=ctx, range01=True))
    ref = model.forward_ref(x, additional_context=ctx, range01=True)
    np.testing.assert_allclose(np.asarray(out), np.asarray(ref), rtol=5e-3, atol=5e-3)

    # path 2: no context, raw (range01=False) output
    out2 = jax.block_until_ready(model.forward(x, additional_context=None, range01=False))
    ref2 = model.forward_ref(x, additional_context=None, range01=False)
    np.testing.assert_allclose(np.asarray(out2), np.asarray(ref2), rtol=5e-3, atol=5e-3)

    print("KERNEL_OK")
</pallas_src>

<mosaic_0001>
module attributes {stable_mosaic.version = 11 : i64} {
  func.func @_encoder_kernel(%arg0: i32, %arg1: i32, %arg2: memref<8x512xf32, #tpu.memory_space<vmem>>, %arg3: memref<512x256xbf16, #tpu.memory_space<vmem>>, %arg4: memref<1x256xf32, #tpu.memory_space<vmem>>, %arg5: memref<256x128xbf16, #tpu.memory_space<vmem>>, %arg6: memref<1x128xf32, #tpu.memory_space<vmem>>, %arg7: memref<8x128xf32, #tpu.memory_space<vmem>>, %arg8: memref<8x128xf32, #tpu.memory_space<vmem>>, %arg9: memref<8x256xf32, #tpu.memory_space<vmem>>) attributes {dimension_semantics = [#tpu.dimension_semantics<parallel>, #tpu.dimension_semantics<arbitrary>], iteration_bounds = array<i64: 1, 1>, scalar_prefetch = 0 : i64, scratch_operands = 1 : i64, tpu.core_type = #tpu.core_type<tc>, window_params = [{transform_indices = @transform_0, window_bounds = array<i64: 8, 512>}, {transform_indices = @transform_1, window_bounds = array<i64: 512, 256>}, {pipeline_mode = #tpu.pipeline_mode<synchronous>, transform_indices = @transform_2, window_bounds = array<i64: 1, 256>}, {pipeline_mode = #tpu.pipeline_mode<synchronous>, transform_indices = @transform_3, window_bounds = array<i64: 256, 128>}, {pipeline_mode = #tpu.pipeline_mode<synchronous>, transform_indices = @transform_4, window_bounds = array<i64: 1, 128>}, {transform_indices = @transform_5, window_bounds = array<i64: 8, 128>}, {transform_indices = @transform_6, window_bounds = array<i64: 8, 128>}]} {
    %c0_i32 = arith.constant 0 : i32
    %0 = arith.cmpi eq, %arg1, %c0_i32 : i32
    %1 = arith.extui %0 : i1 to i32
    %c0_i32_0 = arith.constant 0 : i32
    %2 = arith.cmpi ne, %1, %c0_i32_0 : i32
    scf.if %2 {
      %cst_10 = arith.constant 0.000000e+00 : f32
      %13 = vector.broadcast %cst_10 : f32 to vector<8x256xf32>
      %c0_11 = arith.constant 0 : index
      %c0_12 = arith.constant 0 : index
      %14 = vector.load %arg9[%c0_11, %c0_12] : memref<8x256xf32, #tpu.memory_space<vmem>>, vector<8x256xf32>
      tpu.vector_store %arg9[%c0_11, %c0_12], %13 {strides = array<i32>} : memref<8x256xf32, #tpu.memory_space<vmem>>, vector<8x256xf32>,
    } else {
    }
    %c0 = arith.constant 0 : index
    %c0_1 = arith.constant 0 : index
    %3 = vector.load %arg2[%c0, %c0_1] : memref<8x512xf32, #tpu.memory_space<vmem>>, vector<8x512xf32>
    %4 = arith.truncf %3 : vector<8x512xf32> to vector<8x512xbf16>
    %c0_2 = arith.constant 0 : index
    %c0_3 = arith.constant 0 : index
    %5 = vector.load %arg9[%c0_2, %c0_3] : memref<8x256xf32, #tpu.memory_space<vmem>>, vector<8x256xf32>
    %c0_4 = arith.constant 0 : index
    %c0_5 = arith.constant 0 : index
    %6 = vector.load %arg3[%c0_4, %c0_5] : memref<512x256xbf16, #tpu.memory_space<vmem>>, vector<512x256xbf16>
    %cst = arith.constant dense<0.000000e+00> : vector<8x256xf32>
    %7 = tpu.matmul %4, %6, %cst {dimension_numbers = #tpu.dot_dimension_numbers<[1], [0], [0], [1], [0, 0, 1, 1], [], []>} : vector<8x512xbf16>, vector<512x256xbf16>, vector<8x256xf32> -> vector<8x256xf32>
    %8 = arith.addf %5, %7 : vector<8x256xf32>
    %c0_6 = arith.constant 0 : index
    %c0_7 = arith.constant 0 : index
    %9 = vector.load %arg9[%c0_6, %c0_7] : memref<8x256xf32, #tpu.memory_space<vmem>>, vector<8x256xf32>
    tpu.vector_store %arg9[%c0_6, %c0_7], %8 {strides = array<i32>} : memref<8x256xf32, #tpu.memory_space<vmem>>, vector<8x256xf32>,
    %c0_i32_8 = arith.constant 0 : i32
    %10 = arith.cmpi eq, %arg1, %c0_i32_8 : i32
    %11 = arith.extui %10 : i1 to i32
    %c0_i32_9 = arith.constant 0 : i32
    %12 = arith.cmpi ne, %11, %c0_i32_9 : i32
    scf.if %12 {
      %c0_10 = arith.constant 0 : index
      %c0_11 = arith.constant 0 : index
      %13 = vector.load %arg9[%c0_10, %c0_11] : memref<8x256xf32, #tpu.memory_space<vmem>>, vector<8x256xf32>
      %c0_12 = arith.constant 0 : index
      %c0_13 = arith.constant 0 : index
      %14 = vector.load %arg4[%c0_12, %c0_13] : memref<1x256xf32, #tpu.memory_space<vmem>>, vector<1x256xf32>
      %15 = vector.broadcast %14 : vector<1x256xf32> to vector<8x256xf32>
      %16 = arith.addf %13, %15 : vector<8x256xf32>
      %cst_14 = arith.constant 0.000000e+00 : f32
      %17 = vector.broadcast %cst_14 : f32 to vector<8x256xf32>
      %18 = arith.maximumf %16, %17 : vector<8x256xf32>
      %19 = arith.truncf %18 : vector<8x256xf32> to vector<8x256xbf16>
      %c0_15 = arith.constant 0 : index
      %c0_16 = arith.constant 0 : index
      %20 = vector.load %arg5[%c0_15, %c0_16] : memref<256x128xbf16, #tpu.memory_space<vmem>>, vector<256x128xbf16>
      %cst_17 = arith.constant dense<0.000000e+00> : vector<8x128xf32>
      %21 = tpu.matmul %19, %20, %cst_17 {dimension_numbers = #tpu.dot_dimension_numbers<[1], [0], [0], [1], [0, 0, 1, 1], [], []>} : vector<8x256xbf16>, vector<256x128xbf16>, vector<8x128xf32> -> vector<8x128xf32>
      %c0_18 = arith.constant 0 : index
      %c0_19 = arith.constant 0 : index
      %22 = vector.load %arg6[%c0_18, %c0_19] : memref<1x128xf32, #tpu.memory_space<vmem>>, vector<1x128xf32>
      %23 = vector.broadcast %22 : vector<1x128xf32> to vector<8x128xf32>
      %24 = arith.addf %21, %23 : vector<8x128xf32>
      %c0_20 = arith.constant 0 : index
      %c0_21 = arith.constant 0 : index
      %25 = vector.load %arg7[%c0_20, %c0_21] : memref<8x128xf32, #tpu.memory_space<vmem>>, vector<8x128xf32>
      %26 = arith.addf %24, %25 : vector<8x128xf32>
      %cst_22 = arith.constant 0.000000e+00 : f32
      %27 = vector.broadcast %cst_22 : f32 to vector<8x128xf32>
      %28 = arith.maximumf %26, %27 : vector<8x128xf32>
      %c0_23 = arith.constant 0 : index
      %c0_24 = arith.constant 0 : index
      %29 = vector.load %arg8[%c0_23, %c0_24] : memref<8x128xf32, #tpu.memory_space<vmem>>, vector<8x128xf32>
      tpu.vector_store %arg8[%c0_23, %c0_24], %28 {strides = array<i32>} : memref<8x128xf32, #tpu.memory_space<vmem>>, vector<8x128xf32>,
    } else {
    }
    return
  }
  func.func @transform_0(%arg0: i32, %arg1: i32) -> (i32, i32) {
    %c0_i32 = arith.constant 0 : i32
    return %arg0, %arg1 : i32, i32
  }
  func.func @transform_1(%arg0: i32, %arg1: i32) -> (i32, i32) {
    %c0_i32 = arith.constant 0 : i32
    %c0_i32_0 = arith.constant 0 : i32
    return %arg1, %c0_i32 : i32, i32
  }
  func.func @transform_2(%arg0: i32, %arg1: i32) -> (i32, i32) {
    %c0_i32 = arith.constant 0 : i32
    %c0_i32_0 = arith.constant 0 : i32
    %c0_i32_1 = arith.constant 0 : i32
    return %c0_i32, %c0_i32_0 : i32, i32
  }
  func.func @transform_3(%arg0: i32, %arg1: i32) -> (i32, i32) {
    %c0_i32 = arith.constant 0 : i32
    %c0_i32_0 = arith.constant 0 : i32
    %c0_i32_1 = arith.constant 0 : i32
    return %c0_i32, %c0_i32_0 : i32, i32
  }
  func.func @transform_4(%arg0: i32, %arg1: i32) -> (i32, i32) {
    %c0_i32 = arith.constant 0 : i32
    %c0_i32_0 = arith.constant 0 : i32
    %c0_i32_1 = arith.constant 0 : i32
    return %c0_i32, %c0_i32_0 : i32, i32
  }
  func.func @transform_5(%arg0: i32, %arg1: i32) -> (i32, i32) {
    %c0_i32 = arith.constant 0 : i32
    %c0_i32_0 = arith.constant 0 : i32
    return %arg0, %c0_i32 : i32, i32
  }
  func.func @transform_6(%arg0: i32, %arg1: i32) -> (i32, i32) {
    %c0_i32 = arith.constant 0 : i32
    %c0_i32_0 = arith.constant 0 : i32
    return %arg0, %c0_i32 : i32, i32
  }
}

</mosaic_0001>

<bundles_post_ra>
// kernel: tpu_custom_call.1
= control target key start
LH: loop header
LB: loop body
LE: loop exit
PB: predicated region body
PF: predicated region fallthrough
CT: control target
= control target key end

     0   :  { %11 = vsyncpa [#allocation4], 0  ;;  %s1185_s0 = inlined_call_operand.hbm [shape: f32[8,512], index: 0, kind: input, shape index: {}]   ;;  %s1186_s1 = inlined_call_operand.hbm [shape: bf16[512,256], index: 1, kind: input, shape index: {}]   ;;  %s1187_s2 = inlined_call_operand.vmem [shape: f32[1,256], index: 2, kind: input, shape index: {}]   ;;  %s1188_s3 = inlined_call_operand.hbm [shape: bf16[256,128], index: 3, kind: input, shape index: {}]   ;;  %s1189_s4 = inlined_call_operand.vmem [shape: f32[1,128], index: 4, kind: input, shape index: {}]   ;;  %s1190_s5 = inlined_call_operand.vmem [shape: f32[8,128], index: 5, kind: input, shape index: {}]   ;;  %s1191_s6 = inlined_call_operand.hbm [shape: f32[8,128], index: 6, kind: output, shape index: {}]  }
   0x1   :  { %12 = vsyncpa [#allocation7], 0 }
   0x2   :  { %13 = vsyncpa [#allocation5], 0  ;;  %s1085_s21 = smov [#allocation6]   ;;  %s991_s25 = scalar_lea.hbm %s1186_s1, 8192 }
   0x3   :  { %s29_s22 = sshll.u32 %s1085_s21, 4  ;;  %p992_p0 = scmp.ne.s32.totalorder %s1186_s1, %s991_s25  ;;  %s30_s22 = int_to_ptr.vmem [resolvable:$true] %s29_s22 }
   0x4   :  { %p995_p1 = scmp.lt.u32.totalorder %s991_s25, %s1186_s1 }
   0x6   :  { %p997_p2 = pnand %p995_p1, %p992_p0 }
   0x8   :  { %1000 = shalt.err (!%p997_p2)
}
   0x9   :  { %s1001_s30 = scalar_lea.vmem %s30_s22, 8192  ;;  %p1006_p4 = scmp.lt.s32.totalorder %s30_s22, %s30_s22 }
   0xa   :  { %p1002_p3 = scmp.ne.s32.totalorder %s30_s22, %s1001_s30  ;;  %p1007_p5 = scmp.lt.s32.totalorder %s1001_s30, %s1001_s30 }
   0xc   :  { %p1008_p6 = por %p1007_p5, %p1006_p4 }
   0xe   :  { %p1009_p7 = pnand %p1008_p6, %p1002_p3 }
  0x10   :  { %1012 = shalt.err (!%p1009_p7)
}
  0x11   :  { %s1086_s7 = smov 128   ;;  %s1087_s8 = smov 8  }
  0x12   :  { %35 = dma.hbm_to_vmem [thread:$0]  %s1186_s1, 8192, %s30_s22, [#allocation7], %s1086_s7, %s1086_s7, %s1087_s8  }
  0x13   :  { %s1088_s11 = smov [#allocation3]   ;;  %s1089_s13 = smov [#allocation8]  }
  0x14   :  { %s20_s12 = sshll.u32 %s1088_s11, 4  ;;  %s43_s14 = sshll.u32 %s1089_s13, 4  ;;  %s21_s12 = int_to_ptr.vmem [resolvable:$true] %s20_s12  ;;  %s44_s14 = int_to_ptr.vmem [resolvable:$true] %s43_s14 }
  0x15   :  { %s1013_s17 = scalar_lea.hbm %s1185_s0, 512 }
  0x16   :  { %p1014_p8 = scmp.ne.s32.totalorder %s1185_s0, %s1013_s17  ;;  %p1017_p9 = scmp.lt.u32.totalorder %s1013_s17, %s1185_s0 }
  0x18   :  { %p1019_p10 = pnand %p1017_p9, %p1014_p8 }
  0x1a   :  { %1022 = shalt.err (!%p1019_p10)
}
  0x1b   :  { %s1023_s1 = scalar_lea.vmem %s21_s12, 512  ;;  %p1028_p12 = scmp.lt.s32.totalorder %s21_s12, %s21_s12 }
  0x1c   :  { %p1024_p11 = scmp.ne.s32.totalorder %s21_s12, %s1023_s1  ;;  %p1029_p13 = scmp.lt.s32.totalorder %s1023_s1, %s1023_s1 }
  0x1e   :  { %p1030_p0 = por %p1029_p13, %p1028_p12 }
  0x20   :  { %p1031_p1 = pnand %p1030_p0, %p1024_p11 }
  0x22   :  { %1034 = shalt.err (!%p1031_p1)
}
  0x23   :  { %23 = dma.hbm_to_vmem [thread:$0]  %s1185_s0, 512, %s21_s12, [#allocation4]  }
  0x24   :  { %s1035_s26 = scalar_lea.hbm %s1188_s3, 2048 }
  0x25   :  { %p1036_p2 = scmp.ne.s32.totalorder %s1188_s3, %s1035_s26  ;;  %p1039_p3 = scmp.lt.u32.totalorder %s1035_s26, %s1188_s3 }
  0x27   :  { %p1041_p4 = pnand %p1039_p3, %p1036_p2 }
  0x29   :  { %1044 = shalt.err (!%p1041_p4)
}
  0x2a   :  { %s1045_s7 = scalar_lea.vmem %s44_s14, 2048  ;;  %p1050_p6 = scmp.lt.s32.totalorder %s44_s14, %s44_s14 }
  0x2b   :  { %p1046_p5 = scmp.ne.s32.totalorder %s44_s14, %s1045_s7  ;;  %p1051_p7 = scmp.lt.s32.totalorder %s1045_s7, %s1045_s7 }
  0x2d   :  { %p1052_p8 = por %p1051_p7, %p1050_p6 }
  0x2f   :  { %p1053_p9 = pnand %p1052_p8, %p1046_p5 }
  0x31   :  { %1056 = shalt.err (!%p1053_p9)
}
  0x32   :  { %s1090_s0 = smov 64   ;;  %s1091_s8 = smov 4  }
  0x33   :  { %49 = dma.hbm_to_vmem [thread:$0]  %s1188_s3, 2048, %s44_s14, [#allocation7], %s1090_s0, %s1090_s0, %s1091_s8  }
  0x34   :  { %1079 = dma.done.wait [#allocation4], 512  }
  0x35   :  { %1080 = vsyncadd [#allocation4], 4294966784 }
  0x36   :  { %1081 = dma.done.wait [#allocation7], 10240  }
  0x37   :  { %1082 = vsyncadd [#allocation7], 4294957056  ;;  %v879_v0 = vld [vmem:[#allocation6 + $0x4] ss:$8 sps:$4 sm:$0xff]   ;;  %v883_v2 = vld [vmem:[#allocation6] ss:$8 sps:$4 sm:$0xff]  }
  0x38   :  { %v881_v1 = vld [vmem:[#allocation6 + $0x104] ss:$8 sps:$4 sm:$0xff]   ;;  %464 = vmatprep.subr.bf16.mxu0 %v879_v0  ;;  %v884_v3 = vld [vmem:[#allocation6 + $0x100] ss:$8 sps:$4 sm:$0xff]   ;;  %v885_v4 = vld [vmem:[#allocation6 + $0x14] ss:$8 sps:$4 sm:$0xff]  }
  0x39   :  { %505 = vmatprep.subr.bf16.mxu1 %v881_v1  ;;  %465 = vmatpush1.bf16.msra.mxu0 %v883_v2  ;;  %v887_v5 = vld [vmem:[#allocation6 + $0x114] ss:$8 sps:$4 sm:$0xff]   ;;  %v889_v6 = vld [vmem:[#allocation6 + $0x10] ss:$8 sps:$4 sm:$0xff]   ;;  %v891_v8 = vld [vmem:[#allocation6 + $0x24] ss:$8 sps:$4 sm:$0xff]  }
  0x3a   :  { %506 = vmatpush1.bf16.msra.mxu1 %v884_v3  ;;  %466 = vmatprep.subr.bf16.mxu0 %v885_v4  ;;  %v890_v7 = vld [vmem:[#allocation6 + $0x110] ss:$8 sps:$4 sm:$0xff]   ;;  %v893_v9 = vld [vmem:[#allocation6 + $0x124] ss:$8 sps:$4 sm:$0xff]   ;;  %v895_v10 = vld [vmem:[#allocation6 + $0x20] ss:$8 sps:$4 sm:$0xff]  }
  0x3b   :  { %507 = vmatprep.subr.bf16.mxu1 %v887_v5  ;;  %v896_v11 = vld [vmem:[#allocation6 + $0x120] ss:$8 sps:$4 sm:$0xff]   ;;  %v897_v12 = vld [vmem:[#allocation6 + $0x34] ss:$8 sps:$4 sm:$0xff]   ;;  %v901_v14 = vld [vmem:[#allocation6 + $0x30] ss:$8 sps:$4 sm:$0xff]  }
  0x3c   :  { %v899_v13 = vld [vmem:[#allocation6 + $0x134] ss:$8 sps:$4 sm:$0xff]   ;;  %v902_v15 = vld [vmem:[#allocation6 + $0x130] ss:$8 sps:$4 sm:$0xff]   ;;  %v903_v16 = vld [vmem:[#allocation6 + $0x44] ss:$8 sps:$4 sm:$0xff]  }
  0x3d   :  { %467 = vmatpush1.bf16.msra.mxu0 %v889_v6  ;;  %v905_v17 = vld [vmem:[#allocation6 + $0x144] ss:$8 sps:$4 sm:$0xff]   ;;  %v907_v18 = vld [vmem:[#allocation6 + $0x40] ss:$8 sps:$4 sm:$0xff]   ;;  %v909_v20 = vld [vmem:[#allocation6 + $0x54] ss:$8 sps:$4 sm:$0xff]  }
  0x3e   :  { %508 = vmatpush1.bf16.msra.mxu1 %v890_v7  ;;  %468 = vmatprep.subr.bf16.mxu0 %v891_v8  ;;  %v908_v19 = vld [vmem:[#allocation6 + $0x140] ss:$8 sps:$4 sm:$0xff]   ;;  %v911_v21 = vld [vmem:[#allocation6 + $0x154] ss:$8 sps:$4 sm:$0xff]   ;;  %v913_v22 = vld [vmem:[#allocation6 + $0x50] ss:$8 sps:$4 sm:$0xff]  }
  0x3f   :  { %509 = vmatprep.subr.bf16.mxu1 %v893_v9  ;;  %v914_v23 = vld [vmem:[#allocation6 + $0x150] ss:$8 sps:$4 sm:$0xff]   ;;  %v915_v24 = vld [vmem:[#allocation6 + $0x64] ss:$8 sps:$4 sm:$0xff]   ;;  %v919_v26 = vld [vmem:[#allocation6 + $0x60] ss:$8 sps:$4 sm:$0xff]  }
  0x40   :  { %v917_v25 = vld [vmem:[#allocation6 + $0x164] ss:$8 sps:$4 sm:$0xff]   ;;  %v920_v27 = vld [vmem:[#allocation6 + $0x160] ss:$8 sps:$4 sm:$0xff]   ;;  %v921_v28 = vld [vmem:[#allocation6 + $0x74] ss:$8 sps:$4 sm:$0xff]  }
  0x41   :  { %469 = vmatpush1.bf16.msra.mxu0 %v895_v10  ;;  %v923_v29 = vld [vmem:[#allocation6 + $0x174] ss:$8 sps:$4 sm:$0xff]   ;;  %v925_v30 = vld [vmem:[#allocation6 + $0x70] ss:$8 sps:$4 sm:$0xff]   ;;  %v927_v32 = vld [vmem:[#allocation6 + $0x84] ss:$8 sps:$4 sm:$0xff]  }
  0x42   :  { %510 = vmatpush1.bf16.msra.mxu1 %v896_v11  ;;  %470 = vmatprep.subr.bf16.mxu0 %v897_v12  ;;  %v926_v31 = vld [vmem:[#allocation6 + $0x170] ss:$8 sps:$4 sm:$0xff]   ;;  %v929_v33 = vld [vmem:[#allocation6 + $0x184] ss:$8 sps:$4 sm:$0xff]   ;;  %v931_v34 = vld [vmem:[#allocation6 + $0x80] ss:$8 sps:$4 sm:$0xff]  }
  0x43   :  { %511 = vmatprep.subr.bf16.mxu1 %v899_v13  ;;  %v932_v35 = vld [vmem:[#allocation6 + $0x180] ss:$8 sps:$4 sm:$0xff]   ;;  %v933_v36 = vld [vmem:[#allocation6 + $0x94] ss:$8 sps:$4 sm:$0xff]   ;;  %v937_v38 = vld [vmem:[#allocation6 + $0x90] ss:$8 sps:$4 sm:$0xff]  }
  0x44   :  { %v935_v37 = vld [vmem:[#allocation6 + $0x194] ss:$8 sps:$4 sm:$0xff]   ;;  %v938_v39 = vld [vmem:[#allocation6 + $0x190] ss:$8 sps:$4 sm:$0xff]   ;;  %v939_v40 = vld [vmem:[#allocation6 + $0xa4] ss:$8 sps:$4 sm:$0xff]  }
  0x45   :  { %471 = vmatpush1.bf16.msra.mxu0 %v901_v14  ;;  %v941_v41 = vld [vmem:[#allocation6 + $0x1a4] ss:$8 sps:$4 sm:$0xff]   ;;  %v943_v42 = vld [vmem:[#allocation6 + $0xa0] ss:$8 sps:$4 sm:$0xff]   ;;  %v945_v44 = vld [vmem:[#allocation6 + $0xb4] ss:$8 sps:$4 sm:$0xff]  }
  0x46   :  { %512 = vmatpush1.bf16.msra.mxu1 %v902_v15  ;;  %472 = vmatprep.subr.bf16.mxu0 %v903_v16  ;;  %v944_v43 = vld [vmem:[#allocation6 + $0x1a0] ss:$8 sps:$4 sm:$0xff]   ;;  %v947_v45 = vld [vmem:[#allocation6 + $0x1b4] ss:$8 sps:$4 sm:$0xff]   ;;  %v949_v47 = vld [vmem:[#allocation6 + $0xb0] ss:$8 sps:$4 sm:$0xff]  }
  0x47   :  { %513 = vmatprep.subr.bf16.mxu1 %v905_v17  ;;  %v71_v46 = vld [vmem:[#allocation3 + $0x8] sm:$0xff]  ;;  %v950_v48 = vld [vmem:[#allocation6 + $0x1b0] ss:$8 sps:$4 sm:$0xff]   ;;  %v957_v56 = vld [vmem:[#allocation6 + $0xd4] ss:$8 sps:$4 sm:$0xff]   ;;  %s1092_s15 = smov [#allocation9]  }
  0x48   :  { %v75_v49 = vpack.c.bf16 %v71_v46, %v71_v46  ;;  %v73_v50 = vld [vmem:[#allocation3 + $0x18] sm:$0xff]  ;;  %v951_v51 = vld [vmem:[#allocation6 + $0xc4] ss:$8 sps:$4 sm:$0xff]   ;;  %v955_v54 = vld [vmem:[#allocation6 + $0xc0] ss:$8 sps:$4 sm:$0xff]   ;;  %s758_s16 = sshll.u32 %s1092_s15, 4  ;;  %s759_s16 = int_to_ptr.vmem [resolvable:$true] %s758_s16 }
  0x49   :  { %473 = vmatpush1.bf16.msra.mxu0 %v907_v18  ;;  %v77_v52 = vpack.c.bf16 %v73_v50, %v73_v50  ;;  %v953_v53 = vld [vmem:[#allocation6 + $0x1c4] ss:$8 sps:$4 sm:$0xff]   ;;  %v956_v55 = vld [vmem:[#allocation6 + $0x1c0] ss:$8 sps:$4 sm:$0xff]   ;;  %v959_v57 = vld [vmem:[#allocation6 + $0x1d4] ss:$8 sps:$4 sm:$0xff]   ;;  %p1062_p11 = scmp.lt.s32.totalorder %s759_s16, %s759_s16 }
  0x4a   :  { %514 = vmatpush1.bf16.msra.mxu1 %v908_v19  ;;  %474 = vmatprep.subr.bf16.mxu0 %v909_v20  ;;  %v961_v58 = vld [vmem:[#allocation6 + $0xd0] ss:$8 sps:$4 sm:$0xff]   ;;  %v963_v60 = vld [vmem:[#allocation6 + $0xe4] ss:$8 sps:$4 sm:$0xff]   ;;  %v967_v62 = vld [vmem:[#allocation6 + $0xe0] ss:$8 sps:$4 sm:$0xff]  }
  0x4b   :  { %515 = vmatprep.subr.bf16.mxu1 %v911_v21  ;;  %496 = vmatprep.mubr.bf16.mxu0 %v75_v49  ;;  %v962_v59 = vld [vmem:[#allocation6 + $0x1d0] ss:$8 sps:$4 sm:$0xff]   ;;  %v965_v61 = vld [vmem:[#allocation6 + $0x1e4] ss:$8 sps:$4 sm:$0xff]   ;;  %v968_v63 = vld [vmem:[#allocation6 + $0x1e0] ss:$8 sps:$4 sm:$0xff]  }
  0x4c   :  { %537 = vmatprep.mubr.bf16.mxu1 %v77_v52  ;;  %v969_v0 = vld [vmem:[#allocation6 + $0xf4] ss:$8 sps:$4 sm:$0xff]   ;;  %v973_v2 = vld [vmem:[#allocation6 + $0xf0] ss:$8 sps:$4 sm:$0xff]   ;;  %v70_v4 = vld [vmem:[#allocation3] sm:$0xff]  ;;  %s1057_s17 = scalar_lea.vmem %s759_s16, 128 }
  0x4d   :  { %475 = vmatpush1.bf16.msra.mxu0 %v913_v22  ;;  %v971_v1 = vld [vmem:[#allocation6 + $0x1f4] ss:$8 sps:$4 sm:$0xff]   ;;  %v974_v3 = vld [vmem:[#allocation6 + $0x1f0] ss:$8 sps:$4 sm:$0xff]   ;;  %v975_v6 = vld [vmem:[#allocation8 + $0x40] sm:$0xff]   ;;  %v74_v7 = vpack.c.bf16 %v70_v4, %v70_v4  ;;  %p1058_p10 = scmp.ne.s32.totalorder %s759_s16, %s1057_s17  ;;  %p1063_p12 = scmp.lt.s32.totalorder %s1057_s17, %s1057_s17 }
  0x4e   :  { %516 = vmatpush1.bf16.msra.mxu1 %v914_v23  ;;  %476 = vmatprep.subr.bf16.mxu0 %v915_v24  ;;  %v72_v5 = vld [vmem:[#allocation3 + $0x10] sm:$0xff]  ;;  %v976_v9 = vld [vmem:[#allocation8] sm:$0xff]   ;;  %v977_v10 = vld [vmem:[#allocation8 + $0x48] sm:$0xff]   ;;  %v557_v24 = vlaneseq }
  0x4f   :  { %517 = vmatprep.subr.bf16.mxu1 %v917_v25  ;;  %v76_v8 = vpack.c.bf16 %v72_v5, %v72_v5  ;;  %v978_v11 = vld [vmem:[#allocation8 + $0x8] sm:$0xff]   ;;  %v979_v12 = vld [vmem:[#allocation8 + $0x50] sm:$0xff]   ;;  %v981_v14 = vld [vmem:[#allocation8 + $0x58] sm:$0xff]   ;;  %p1064_p13 = por %p1063_p12, %p1062_p11 }
  0x50   :  { %v980_v13 = vld [vmem:[#allocation8 + $0x10] sm:$0xff]   ;;  %v982_v15 = vld [vmem:[#allocation8 + $0x18] sm:$0xff]   ;;  %v983_v16 = vld [vmem:[#allocation8 + $0x60] sm:$0xff]   ;;  %v558_v25 = vshrl.u32 %v557_v24, 7 }
  0x51   :  { %477 = vmatpush1.bf16.msra.mxu0 %v919_v26  ;;  %v984_v17 = vld [vmem:[#allocation8 + $0x20] sm:$0xff]   ;;  %v985_v18 = vld [vmem:[#allocation8 + $0x68] sm:$0xff]   ;;  %v987_v20 = vld [vmem:[#allocation8 + $0x70] sm:$0xff]   ;;  %p1065_p0 = pnand %p1064_p13, %p1058_p10 }
  0x52   :  { %518 = vmatpush1.bf16.msra.mxu1 %v920_v27  ;;  %478 = vmatprep.subr.bf16.mxu0 %v921_v28  ;;  %v986_v19 = vld [vmem:[#allocation8 + $0x28] sm:$0xff]   ;;  %v988_v21 = vld [vmem:[#allocation8 + $0x30] sm:$0xff]   ;;  %v989_v22 = vld [vmem:[#allocation8 + $0x78] sm:$0xff]   ;;  %v559_v26 = vsub.s32 0, %v558_v25  ;;  %v563_v28 = vsub.s32 1, %v558_v25 }
  0x53   :  { %519 = vmatprep.subr.bf16.mxu1 %v923_v29  ;;  %v990_v23 = vld [vmem:[#allocation8 + $0x38] sm:$0xff]   ;;  %v555_v27 = vld [vmem:[%s1187_s2] sm:$0x3] }
  0x54   :  { %v560_v29 = vrot.slane %v555_v27, %v559_v26 }
  0x55   :  { %479 = vmatpush1.bf16.msra.mxu0 %v925_v30 }
  0x56   :  { %520 = vmatpush1.bf16.msra.mxu1 %v926_v31  ;;  %480 = vmatprep.subr.bf16.mxu0 %v927_v32  ;;  %v564_v32 = vrot.slane %v555_v27, %v563_v28 }
  0x57   :  { %521 = vmatprep.subr.bf16.mxu1 %v929_v33 }
  0x59   :  { %481 = vmatpush1.bf16.msra.mxu0 %v931_v34 }
  0x5a   :  { %522 = vmatpush1.bf16.msra.mxu1 %v932_v35  ;;  %482 = vmatprep.subr.bf16.mxu0 %v933_v36 }
  0x5b   :  { %523 = vmatprep.subr.bf16.mxu1 %v935_v37 }
  0x5d   :  { %483 = vmatpush1.bf16.msra.mxu0 %v937_v38 }
  0x5e   :  { %524 = vmatpush1.bf16.msra.mxu1 %v938_v39  ;;  %484 = vmatprep.subr.bf16.mxu0 %v939_v40 }
  0x5f   :  { %525 = vmatprep.subr.bf16.mxu1 %v941_v41 }
  0x61   :  { %485 = vmatpush1.bf16.msra.mxu0 %v943_v42 }
  0x62   :  { %526 = vmatpush1.bf16.msra.mxu1 %v944_v43  ;;  %486 = vmatprep.subr.bf16.mxu0 %v945_v44 }
  0x63   :  { %527 = vmatprep.subr.bf16.mxu1 %v947_v45 }
  0x65   :  { %487 = vmatpush1.bf16.msra.mxu0 %v949_v47 }
  0x66   :  { %528 = vmatpush1.bf16.msra.mxu1 %v950_v48  ;;  %488 = vmatprep.subr.bf16.mxu0 %v951_v51  ;;  %v832_v48 = vld [vmem:[%s1189_s4] ss:$0 sm:$0xff] }
  0x67   :  { %529 = vmatprep.subr.bf16.mxu1 %v953_v53  ;;  %v748_v53 = vld [vmem:[%s1190_s5] sm:$0xff] }
  0x69   :  { %489 = vmatpush1.bf16.msra.mxu0 %v955_v54 }
  0x6a   :  { %530 = vmatpush1.bf16.msra.mxu1 %v956_v55  ;;  %490 = vmatprep.subr.bf16.mxu0 %v957_v56 }
  0x6b   :  { %531 = vmatprep.subr.bf16.mxu1 %v959_v57 }
  0x6d   :  { %491 = vmatpush1.bf16.msra.mxu0 %v961_v58 }
  0x6e   :  { %532 = vmatpush1.bf16.msra.mxu1 %v962_v59  ;;  %492 = vmatprep.subr.bf16.mxu0 %v963_v60 }
  0x6f   :  { %533 = vmatprep.subr.bf16.mxu1 %v965_v61 }
  0x71   :  { %493 = vmatpush1.bf16.msra.mxu0 %v967_v62 }
  0x72   :  { %534 = vmatpush1.bf16.msra.mxu1 %v968_v63  ;;  %494 = vmatprep.subr.bf16.mxu0 %v969_v0 }
  0x73   :  { %535 = vmatprep.subr.bf16.mxu1 %v971_v1 }
  0x75   :  { %495 = vmatpush1.bf16.msra.mxu0 %v973_v2 }
  0x76   :  { %536 = vmatpush1.bf16.msra.mxu1 %v974_v3  ;;  %849 = vmatprep.subr.bf16.mxu0 %v975_v6 }
  0x78   :  { %497 = vmatmul.mubr.bf16.vlgmr.msra.gmra.mrb[0].mxu0 %v74_v7 }
  0x79   :  { %538 = vmatmul.mubr.bf16.vlgmr.msra.gmra.mrb[0].mxu1 %v76_v8  ;;  %850 = vmatpush3.bf16.msra.mxu0 %v976_v9 }
  0x7a   :  { %851 = vmatprep.subr.bf16.mxu0 %v977_v10 }
  0x7d   :  { %852 = vmatpush3.bf16.msra.mxu0 %v978_v11 }
  0x7e   :  { %853 = vmatprep.subr.bf16.mxu0 %v979_v12 }
  0x81   :  { %854 = vmatpush3.bf16.msra.mxu0 %v980_v13 }
  0x82   :  { %855 = vmatprep.subr.bf16.mxu0 %v981_v14 }
  0x85   :  { %856 = vmatpush3.bf16.msra.mxu0 %v982_v15 }
  0x86   :  { %857 = vmatprep.subr.bf16.mxu0 %v983_v16 }
  0x89   :  { %858 = vmatpush3.bf16.msra.mxu0 %v984_v17 }
  0x8a   :  { %859 = vmatprep.subr.bf16.mxu0 %v985_v18 }
  0x8d   :  { %860 = vmatpush3.bf16.msra.mxu0 %v986_v19 }
  0x8e   :  { %861 = vmatprep.subr.bf16.mxu0 %v987_v20 }
  0x91   :  { %862 = vmatpush3.bf16.msra.mxu0 %v988_v21 }
  0x92   :  { %863 = vmatprep.subr.bf16.mxu0 %v989_v22 }
  0x95   :  { %864 = vmatpush3.bf16.msra.mxu0 %v990_v23 }
 0x14b   :  { %v498_v30 = vpop.f32.mrb[0].mxu0 }
 0x14c   :  { %v539_v31 = vpop.f32.mrb[0].mxu1  ;;  %v500_v34 = vpop.f32.mrb[1].mxu0 }
 0x14d   :  { %v540_v33 = vadd.f32 %v539_v31, %v498_v30  ;;  %v541_v35 = vpop.f32.mrb[1].mxu1  ;;  %v502_v37 = vpop.f32.mrb[2].mxu0 }
 0x14e   :  { %v542_v36 = vadd.f32 %v541_v35, %v500_v34  ;;  %v543_v38 = vpop.f32.mrb[2].mxu1  ;;  %v503_v40 = vpop.f32.mrb[3].mxu0 }
 0x14f   :  { %v567_v39 = vadd.f32 %v560_v29, %v540_v33  ;;  %v544_v41 = vpop.f32.mrb[3].mxu1 }
 0x150   :  { %v568_v42 = vadd.f32 %v564_v32, %v542_v36 }
 0x151   :  { %v569_v43 = vmax.f32 %v567_v39, 0.0 }
 0x152   :  { %v570_v44 = vmax.f32 %v568_v42, 0.0 }
 0x153   :  { %v571_v46 = vpack.c.bf16 %v569_v43, %v569_v43 }
 0x154   :  { %v572_v45 = vpack.c.bf16 %v570_v44, %v570_v44 }
 0x156   :  { %740 = vmatprep.mubr.bf16.mxu0 %v572_v45 }
 0x157   :  { %741 = vmatmul.mubr.bf16.vlgmr.msra.gmra.mrb[4].mxu0 %v571_v46 }
 0x22a   :  { %v865_v47 = vpop.f32.mrb[4].mxu0 }
 0x22b   :  { %v866_v49 = vpop.f32.mrb[5].mxu0 }
 0x22c   :  { %v867_v50 = vadd.f32 %v866_v49, %v865_v47  ;;  %v868_v51 = vpop.f32.mrb[6].mxu0 }
 0x22d   :  { %v869_v52 = vpop.f32.mrb[7].mxu0 }
 0x22e   :  { %v743_v54 = vadd.f32 %v867_v50, %v832_v48 }
 0x230   :  { %v749_v55 = vadd.f32 %v748_v53, %v743_v54 }
 0x232   :  { %v750_v56 = vmax.f32 %v749_v55, 0.0 }
 0x234   :  { %751 = vst [vmem:[#allocation9] sm:$0xff] %v750_v56 }
 0x235   :  { %1068 = shalt.err (!%p1065_p0)
}
 0x236   :  { %s1069_s19 = scalar_lea.hbm %s1191_s6, 128 }
 0x237   :  { %p1070_p1 = scmp.ne.s32.totalorder %s1191_s6, %s1069_s19  ;;  %p1073_p2 = scmp.lt.u32.totalorder %s1069_s19, %s1191_s6 }
 0x239   :  { %p1075_p3 = pnand %p1073_p2, %p1070_p1 }
 0x23b   :  { %1078 = shalt.err (!%p1075_p3)
}
 0x23c   :  { %761 = dma.vmem_to_hbm [thread:$0]  %s759_s16, 128, %s1191_s6, [#allocation5]  }
 0x23d   :  { %1083 = dma.done.wait [#allocation5], 128  }
 0x23e   :  { %1084 = vsyncadd [#allocation5], 4294967168 }
 0x23f   :  { %765 = vsyncpa [#allocation4], 1 }
 0x240   :  { %766 = vsyncpa [#allocation7], 1 }
 0x241   :  { %767 = vsyncpa [#allocation5], 1 }

</bundles_post_ra>
